<compile_context>
chip_gen: v6e
topology: v6e:2x2x1
jax: 0.10.0
libtpu: 0.0.40
codegen_flags: <defaults>
</compile_context>

<pallas_src>
import jax
import jax.numpy as jnp
from jax.experimental import pallas as pl
from jax.experimental.pallas import tpu as pltpu

_LANE = 128
_SUBLANE = 8


def _round_up(n, m):
    return ((n + m - 1) // m) * m


# ----------------------------------------------------------------------------
# One-time parameter packing: two VMEM slabs + static layer metadata
# ----------------------------------------------------------------------------
def prepare_mlp(params, mode, action_dim=0):
    """params: list of (W (in,out), b (1,out)) mirroring the PyTorch layers.

    Returns (wslab, vslab, meta, W, d_out, final_tanh, use_actions).
    wslab rows are stacked per-layer weight blocks, each (round_up(K,8), W)
    with real weights in [:K, :N] and zeros elsewhere (zero padding is inert:
    padded activation lanes are exactly 0).  vslab rows are per-layer 8-row
    blocks: row 0 = bias; for the critic concat layer rows 1:1+na hold the
    action-weight rows (W[-na:]), so the torch.cat is removed algebraically.
    """
    n_layers = len(params)
    n_hidden = n_layers - 1
    na = action_dim
    use_actions = (na > 0) and (n_hidden > 2)   # cat only happens at i == 2

    all_dims = []
    for (w, _b) in params:
        all_dims += [w.shape[0], w.shape[1]]
    W = max(_LANE, _round_up(max(all_dims), _LANE))   # slab lane width

    meta, w_blocks, v_blocks = [], [], []
    w_off = v_off = 0
    for i, (w, b) in enumerate(params):
        split = use_actions and (i == 2)
        if split:
            wx, wa = w[:-na, :], w[-na:, :]           # (x, actions) concat order
        else:
            wx, wa = w, None
        K, N = wx.shape
        Kp = _round_up(K, _SUBLANE)

        blk = jnp.zeros((Kp, W), jnp.float32).at[:K, :N].set(wx)
        w_blocks.append(blk)

        vrows = _round_up(1 + (na if split else 0), _SUBLANE)
        vb = jnp.zeros((vrows, W), jnp.float32).at[0, :N].set(b.reshape(-1))
        if split:
            vb = vb.at[1:1 + na, :N].set(wa)
        v_blocks.append(vb)

        meta.append(dict(
            w_off=w_off, rows=Kp,
            k_use=(K if i == 0 else Kp),    # layer 0 may have K % 8 != 0
            v_off=v_off, split=split, n_out=N))
        w_off += Kp
        v_off += vrows

    wslab = jnp.concatenate(w_blocks, axis=0)
    vslab = jnp.concatenate(v_blocks, axis=0)
    d_out = params[-1][0].shape[1]
    final_tanh = (mode == "actor")
    return wslab, vslab, meta, W, d_out, final_tanh, use_actions


# ----------------------------------------------------------------------------
# Fused kernel: h = x ; for each layer: h = act(h @ W + b [+ a (.) Wa])
# ----------------------------------------------------------------------------
def _build_fused_kernel(meta, final_tanh, use_actions, na):
    n_layers = len(meta)

    def kernel(*refs):
        if use_actions:
            x_ref, a_ref, w_ref, v_ref, o_ref = refs
            a = a_ref[...]
        else:
            x_ref, w_ref, v_ref, o_ref = refs
            a = None

        h = x_ref[...]                                 # (B, d_in) real width
        for li, m in enumerate(meta):
            k = m["k_use"]
            if li > 0:
                h = h[:, :k]                           # narrow (B,W) -> (B,Kp); padded lanes are 0
            w = w_ref[m["w_off"]:m["w_off"] + k, :]    # static, sublane-aligned slab view
            b = v_ref[m["v_off"]:m["v_off"] + 1, :]    # (1, W) bias row
            y = jnp.dot(h, w, preferred_element_type=jnp.float32) + b
            if m["split"]:
                wa = v_ref[m["v_off"] + 1:m["v_off"] + 1 + na, :]
                if na == 1:
                    y = y + a * wa                     # VPU outer product, no K=1 MXU dot
                else:
                    y = y + jnp.dot(a, wa, preferred_element_type=jnp.float32)
            if li < n_layers - 1:
                h = jnp.maximum(y, 0.0)                # ReLU (VPU)
            else:
                h = jnp.tanh(y) if final_tanh else y   # tanh on EUP
        o_ref[...] = h.astype(o_ref.dtype)             # lane-dense (last dim = W) store

    return kernel


def _choose_batch_tile(B):
    # Grid the batch only when there is enough work to split across
    # TensorCores (v7x: 2 TCs/chip). Below that, a single full-block call is
    # launch/latency bound and a grid only adds per-step overhead.
    if B >= 512 and B % 256 == 0:
        return 256
    return None


# ----------------------------------------------------------------------------
# Forward builder: prepare once, cache the jitted pallas_call
# ----------------------------------------------------------------------------
def make_mlp_forward(params, mode, action_dim=0):
    (wslab, vslab, meta, W, d_out,
     final_tanh, use_actions) = prepare_mlp(params, mode, action_dim)
    na = action_dim
    kernel = _build_fused_kernel(meta, final_tanh, use_actions, na)

    flops_per_row = 0
    for (w, _b) in params:
        K, N = w.shape
        flops_per_row += 2 * K * N + N

    def _call(x, actions, ws, vs):
        B, d_in = x.shape
        bytes_accessed = 4 * (x.size + (actions.size if actions is not None else 0)
                              + ws.size + vs.size + B * W)
        cost = pl.CostEstimate(
            flops=flops_per_row * B,
            transcendentals=(B * d_out if final_tanh else 0),
            bytes_accessed=bytes_accessed)

        inputs = ([x, actions] if use_actions else [x]) + [ws, vs]
        tb = _choose_batch_tile(B)
        if tb is None:
            # Single full-block invocation; everything VMEM-resident.
            vmem = pl.BlockSpec(memory_space=pltpu.MemorySpace.VMEM)
            out = pl.pallas_call(
                kernel,
                out_shape=jax.ShapeDtypeStruct((B, W), x.dtype),
                in_specs=[vmem] * len(inputs),
                out_specs=vmem,
                cost_estimate=cost,
            )(*inputs)
        else:
            # Batch grid: parameters revisit the same block (stay resident);
            # "parallel" lets v7x shard batch tiles across its 2 TCs.
            in_specs = [pl.BlockSpec((tb, d_in), lambda i: (i, 0))]
            if use_actions:
                in_specs.append(pl.BlockSpec((tb, na), lambda i: (i, 0)))
            in_specs += [pl.BlockSpec(ws.shape, lambda i: (0, 0)),
                         pl.BlockSpec(vs.shape, lambda i: (0, 0))]
            out = pl.pallas_call(
                kernel,
                out_shape=jax.ShapeDtypeStruct((B, W), x.dtype),
                grid=(B // tb,),
                in_specs=in_specs,
                out_specs=pl.BlockSpec((tb, W), lambda i: (i, 0)),
                compiler_params=pltpu.CompilerParams(
                    dimension_semantics=("parallel",)),
                cost_estimate=cost,
            )(*inputs)
        # Slice fuses with the surrounding jit program (no extra launch).
        return out[:, :d_out]

    if use_actions:
        jitted = jax.jit(_call)

        def forward(x, actions):
            return jitted(x, actions, wslab, vslab)
    else:
        jitted = jax.jit(lambda x, ws, vs: _call(x, None, ws, vs))

        def forward(x, actions=None):   # actions ignored, as in the module when len(dims)-2 <= 2
            return jitted(x, wslab, vslab)

    # TODO(synk): if actor + critic (or target nets) are evaluated on the same
    # x in one DDPG step, fuse them into a single pallas_call with two outputs
    # to halve kernel launches; not done here since the module is a single MLP.
    return forward


# ----------------------------------------------------------------------------
# Parameter construction (mirrors nn.Linear default init, deterministic)
# ----------------------------------------------------------------------------
def init_mlp_params(key, dims, mode):
    params = []
    for i in range(len(dims) - 1):
        fan_in = dims[i]
        if i == 1 and mode == "critic":
            fan_out = dims[i + 1] - 1
        else:
            fan_out = dims[i + 1]
        key, kw, kb = jax.random.split(key, 3)
        bound = 1.0 / jnp.sqrt(jnp.float32(fan_in))
        w = jax.random.uniform(kw, (fan_in, fan_out), jnp.float32, -bound, bound)
        b = jax.random.uniform(kb, (1, fan_out), jnp.float32, -bound, bound)
        params.append((w, b))
    return params


# ----------------------------------------------------------------------------
# Pure-JAX reference (identical control flow to the PyTorch module)
# ----------------------------------------------------------------------------
def mlp_forward_ref(params, x, mode, actions=None):
    n_hidden = len(params) - 1
    for i in range(n_hidden):
        if actions is not None and i == 2:
            x = jnp.concatenate((x, actions), axis=1)
        w, b = params[i]
        x = jnp.maximum(x @ w + b, 0.0)
    w, b = params[-1]
    o = x @ w + b
    if mode == "actor":
        o = jnp.tanh(o)
    return o


if __name__ == "__main__":
    key = jax.random.PRNGKey(0)
    k_pa, k_pc, k_x, k_a, k_xl = jax.random.split(key, 5)

    batch = 4

    # ---- actor: dims = [obs, h1, h2, act_dim], tanh output ------------------
    actor_dims = [16, 32, 32, 8]
    actor_params = init_mlp_params(k_pa, actor_dims, mode="actor")
    actor_fwd = make_mlp_forward(actor_params, mode="actor")

    x = jax.random.normal(k_x, (batch, actor_dims[0]), jnp.float32)
    out_a = jax.block_until_ready(actor_fwd(x))
    ref_a = mlp_forward_ref(actor_params, x, mode="actor")
    assert out_a.shape == (batch, actor_dims[-1])
    assert jnp.allclose(out_a, ref_a, atol=1e-4, rtol=1e-4)
    # second call hits the cached jit (no retrace / rebuild)
    out_a2 = jax.block_until_ready(actor_fwd(x))
    assert jnp.allclose(out_a2, ref_a, atol=1e-4, rtol=1e-4)

    # ---- critic: 5-dim net so the actions branch (i == 2) is exercised ------
    # layer 1 outputs dims[2]-1; the (removed) concat with a 1-dim action
    # restores dims[2] as layer 2's input width (handled by the slab split).
    critic_dims = [16, 32, 32, 32, 1]
    critic_params = init_mlp_params(k_pc, critic_dims, mode="critic")
    critic_fwd = make_mlp_forward(critic_params, mode="critic", action_dim=1)

    actions = jax.random.normal(k_a, (batch, 1), jnp.float32)
    out_c = jax.block_until_ready(critic_fwd(x, actions))
    ref_c = mlp_forward_ref(critic_params, x, mode="critic", actions=actions)
    assert out_c.shape == (batch, 1)
    assert jnp.allclose(out_c, ref_c, atol=1e-4, rtol=1e-4)

    # ---- large batch exercises the batch-grid ("parallel") path -------------
    xl = jax.random.normal(k_xl, (512, actor_dims[0]), jnp.float32)
    out_l = jax.block_until_ready(actor_fwd(xl))
    ref_l = mlp_forward_ref(actor_params, xl, mode="actor")
    assert out_l.shape == (512, actor_dims[-1])
    assert jnp.allclose(out_l, ref_l, atol=1e-4, rtol=1e-4)

    print("KERNEL_OK")
</pallas_src>

<mosaic_0001>
module attributes {stable_mosaic.version = 11 : i64} {
  func.func @kernel(%arg0: memref<4x16xf32, #tpu.memory_space<vmem>>, %arg1: memref<80x128xf32, #tpu.memory_space<vmem>>, %arg2: memref<24x128xf32, #tpu.memory_space<vmem>>, %arg3: memref<4x128xf32, #tpu.memory_space<vmem>>) attributes {dimension_semantics = [], scalar_prefetch = 0 : i64, scratch_operands = 0 : i64, tpu.core_type = #tpu.core_type<tc>} {
    %c0 = arith.constant 0 : index
    %c0_0 = arith.constant 0 : index
    %0 = vector.load %arg0[%c0, %c0_0] : memref<4x16xf32, #tpu.memory_space<vmem>>, vector<4x16xf32>
    %c0_1 = arith.constant 0 : index
    %c0_2 = arith.constant 0 : index
    %1 = vector.load %arg1[%c0_1, %c0_2] : memref<80x128xf32, #tpu.memory_space<vmem>>, vector<16x128xf32>
    %c0_3 = arith.constant 0 : index
    %c0_4 = arith.constant 0 : index
    %2 = vector.load %arg2[%c0_3, %c0_4] : memref<24x128xf32, #tpu.memory_space<vmem>>, vector<1x128xf32>
    %cst = arith.constant dense<0.000000e+00> : vector<4x128xf32>
    %3 = tpu.matmul %0, %1, %cst {dimension_numbers = #tpu.dot_dimension_numbers<[1], [0], [0], [1], [0, 0, 1, 1], [], []>} : vector<4x16xf32>, vector<16x128xf32>, vector<4x128xf32> -> vector<4x128xf32>
    %4 = vector.broadcast %2 : vector<1x128xf32> to vector<4x128xf32>
    %5 = arith.addf %3, %4 : vector<4x128xf32>
    %cst_5 = arith.constant 0.000000e+00 : f32
    %6 = vector.broadcast %cst_5 : f32 to vector<4x128xf32>
    %7 = arith.maximumf %5, %6 : vector<4x128xf32>
    %8 = vector.extract_strided_slice %7 {offsets = [0, 0], sizes = [4, 32], strides = [1, 1]} : vector<4x128xf32> to vector<4x32xf32>
    %c16 = arith.constant 16 : index
    %c0_6 = arith.constant 0 : index
    %9 = vector.load %arg1[%c16, %c0_6] : memref<80x128xf32, #tpu.memory_space<vmem>>, vector<32x128xf32>
    %c8 = arith.constant 8 : index
    %c0_7 = arith.constant 0 : index
    %10 = vector.load %arg2[%c8, %c0_7] : memref<24x128xf32, #tpu.memory_space<vmem>>, vector<1x128xf32>
    %cst_8 = arith.constant dense<0.000000e+00> : vector<4x128xf32>
    %11 = tpu.matmul %8, %9, %cst_8 {dimension_numbers = #tpu.dot_dimension_numbers<[1], [0], [0], [1], [0, 0, 1, 1], [], []>} : vector<4x32xf32>, vector<32x128xf32>, vector<4x128xf32> -> vector<4x128xf32>
    %12 = vector.broadcast %10 : vector<1x128xf32> to vector<4x128xf32>
    %13 = arith.addf %11, %12 : vector<4x128xf32>
    %cst_9 = arith.constant 0.000000e+00 : f32
    %14 = vector.broadcast %cst_9 : f32 to vector<4x128xf32>
    %15 = arith.maximumf %13, %14 : vector<4x128xf32>
    %16 = vector.extract_strided_slice %15 {offsets = [0, 0], sizes = [4, 32], strides = [1, 1]} : vector<4x128xf32> to vector<4x32xf32>
    %c48 = arith.constant 48 : index
    %c0_10 = arith.constant 0 : index
    %17 = vector.load %arg1[%c48, %c0_10] : memref<80x128xf32, #tpu.memory_space<vmem>>, vector<32x128xf32>
    %c16_11 = arith.constant 16 : index
    %c0_12 = arith.constant 0 : index
    %18 = vector.load %arg2[%c16_11, %c0_12] : memref<24x128xf32, #tpu.memory_space<vmem>>, vector<1x128xf32>
    %cst_13 = arith.constant dense<0.000000e+00> : vector<4x128xf32>
    %19 = tpu.matmul %16, %17, %cst_13 {dimension_numbers = #tpu.dot_dimension_numbers<[1], [0], [0], [1], [0, 0, 1, 1], [], []>} : vector<4x32xf32>, vector<32x128xf32>, vector<4x128xf32> -> vector<4x128xf32>
    %20 = vector.broadcast %18 : vector<1x128xf32> to vector<4x128xf32>
    %21 = arith.addf %19, %20 : vector<4x128xf32>
    %22 = math.tanh %21 : vector<4x128xf32>
    %c0_14 = arith.constant 0 : index
    %c0_15 = arith.constant 0 : index
    %23 = vector.load %arg3[%c0_14, %c0_15] : memref<4x128xf32, #tpu.memory_space<vmem>>, vector<4x128xf32>
    tpu.vector_store %arg3[%c0_14, %c0_15], %22 {strides = array<i32>} : memref<4x128xf32, #tpu.memory_space<vmem>>, vector<4x128xf32>,
    return
  }
}

</mosaic_0001>

<bundles_post_ra>
// kernel: _lambda_.1
= control target key start
LH: loop header
LB: loop body
LE: loop exit
PB: predicated region body
PF: predicated region fallthrough
CT: control target
= control target key end

     0   :  { %8 = vsyncpa [#allocation3], 0  ;;  %s510_s0 = inlined_call_operand.hbm [shape: f32[4,16], index: 0, kind: input, shape index: {}]   ;;  %s511_s1 = inlined_call_operand.hbm [shape: f32[80,128], index: 1, kind: input, shape index: {}]   ;;  %s512_s2 = inlined_call_operand.hbm [shape: f32[24,128], index: 2, kind: input, shape index: {}]   ;;  %s513_s3 = inlined_call_operand.hbm [shape: f32[4,128], index: 3, kind: output, shape index: {}]  }
   0x1   :  { %9 = vsyncpa [#allocation6], 0 }
   0x2   :  { %10 = vsyncpa [#allocation4], 0  ;;  %s465_s12 = smov [#allocation5]  }
   0x3   :  { %s26_s13 = sshll.u32 %s465_s12, 4  ;;  %s27_s13 = int_to_ptr.vmem [resolvable:$true] %s26_s13 }
   0x4   :  { %s387_s14 = scalar_lea.vmem %s27_s13, 1280  ;;  %p392_p1 = scmp.lt.s32.totalorder %s27_s13, %s27_s13 }
   0x5   :  { %p388_p0 = scmp.ne.s32.totalorder %s27_s13, %s387_s14  ;;  %p393_p2 = scmp.lt.s32.totalorder %s387_s14, %s387_s14 }
   0x7   :  { %p394_p3 = por %p393_p2, %p392_p1 }
   0x9   :  { %p395_p4 = pnand %p394_p3, %p388_p0 }
   0xb   :  { %398 = shalt.err (!%p395_p4)
}
   0xc   :  { %s466_s15 = smov 128   ;;  %s467_s16 = smov 8  }
   0xd   :  { %32 = dma.hbm_to_vmem [thread:$0]  %s511_s1, 1280, %s27_s13, [#allocation6], %s466_s15, %s466_s15, %s467_s16  }
   0xe   :  { %s468_s19 = smov [#allocation2]   ;;  %s469_s21 = smov [#allocation7]  }
   0xf   :  { %s17_s20 = sshll.u32 %s468_s19, 4  ;;  %s38_s22 = sshll.u32 %s469_s21, 4  ;;  %s18_s20 = int_to_ptr.vmem [resolvable:$true] %s17_s20  ;;  %s39_s22 = int_to_ptr.vmem [resolvable:$true] %s38_s22 }
  0x10   :  { %s407_s23 = scalar_lea.vmem %s18_s20, 64  ;;  %p412_p6 = scmp.lt.s32.totalorder %s18_s20, %s18_s20 }
  0x11   :  { %p408_p5 = scmp.ne.s32.totalorder %s18_s20, %s407_s23  ;;  %p413_p7 = scmp.lt.s32.totalorder %s407_s23, %s407_s23 }
  0x13   :  { %p414_p8 = por %p413_p7, %p412_p6 }
  0x15   :  { %p415_p9 = pnand %p414_p8, %p408_p5 }
  0x17   :  { %418 = shalt.err (!%p415_p9)
}
  0x18   :  { %20 = dma.hbm_to_vmem [thread:$0]  %s510_s0, 64, %s18_s20, [#allocation3]  }
  0x19   :  { %s427_s26 = scalar_lea.vmem %s39_s22, 384  ;;  %p432_p11 = scmp.lt.s32.totalorder %s39_s22, %s39_s22 }
  0x1a   :  { %p428_p10 = scmp.ne.s32.totalorder %s39_s22, %s427_s26  ;;  %p433_p12 = scmp.lt.s32.totalorder %s427_s26, %s427_s26 }
  0x1c   :  { %p434_p13 = por %p433_p12, %p432_p11 }
  0x1e   :  { %p435_p0 = pnand %p434_p13, %p428_p10 }
  0x20   :  { %438 = shalt.err (!%p435_p0)
}
  0x21   :  { %44 = dma.hbm_to_vmem [thread:$0]  %s512_s2, 384, %s39_s22, [#allocation6], %s466_s15, %s466_s15, %s467_s16  }
  0x22   :  { %459 = dma.done.wait [#allocation3], 64  }
  0x23   :  { %460 = vsyncadd [#allocation3], 4294967232 }
  0x24   :  { %461 = dma.done.wait [#allocation6], 1664  }
  0x25   :  { %462 = vsyncadd [#allocation6], 4294965632  ;;  %v470_v0 = vmov 0.0   ;;  %vm471_vm0 = vmmov 0   ;;  %v56_v1 = vld [vmem:[#allocation5 + $0x8] sm:$0xff]  ;;  %v55_v2 = vld [vmem:[#allocation5] sm:$0xff] }
  0x26   :  { %340 = vmatprep.subr.mxu0 %v470_v0  ;;  %344 = vmatprep.mubr.msk.f32.mxu0 %vm471_vm0, %v470_v0  ;;  %v54_v3 = vld [vmem:[#allocation2] sm:$0xf]  ;;  %vm62_vm1 = vcmask 130048   ;;  %v140_v4 = vld [vmem:[#allocation5 + $0x28] sm:$0xff]  ;;  %v139_v5 = vld [vmem:[#allocation5 + $0x20] sm:$0xff]  ;;  %vm146_vm2 = vcmask 261120  }
  0x27   :  { %347 = vmatprep.subr.mxu1 %v470_v0  ;;  %355 = vmatprep.mubr.msk.f32.mxu1 %vm471_vm0, %v470_v0  ;;  %v138_v6 = vld [vmem:[#allocation5 + $0x18] sm:$0xff]  ;;  %v137_v7 = vld [vmem:[#allocation5 + $0x10] sm:$0xff]  ;;  %v224_v8 = vld [vmem:[#allocation5 + $0x48] sm:$0xff]  ;;  %s472_s0 = smov [#allocation8]  }
  0x28   :  { %341 = vmatpush3.msra.mxu0 %v56_v1  ;;  %348 = vmatpush3.msra.mxu1 %v140_v4  ;;  %v321_v9 = vld [vmem:[#allocation7] ss:$0 sm:$0xff]  ;;  %v223_v14 = vld [vmem:[#allocation5 + $0x40] sm:$0xff]  ;;  %v222_v15 = vld [vmem:[#allocation5 + $0x38] sm:$0xff]  ;;  %s311_s2 = sshll.u32 %s472_s0, 4  ;;  %s312_s2 = int_to_ptr.vmem [resolvable:$true] %s311_s2 }
  0x29   :  { %342 = vmatprep.subr.mxu0 %v470_v0  ;;  %349 = vmatprep.subr.mxu1 %v470_v0  ;;  %v221_v16 = vld [vmem:[#allocation5 + $0x30] sm:$0xff]  ;;  %v323_v17 = vld [vmem:[#allocation7 + $0x8] ss:$0 sm:$0xff]  ;;  %v325_v22 = vld [vmem:[#allocation7 + $0x10] ss:$0 sm:$0xff]  ;;  %s439_s28 = scalar_lea.vmem %s312_s2, 64  ;;  %p444_p2 = scmp.lt.s32.totalorder %s312_s2, %s312_s2 }
  0x2a   :  { %343 = vmatpush3.msra.mxu0 %v55_v2  ;;  %350 = vmatpush3.msra.mxu1 %v139_v5  ;;  %p440_p1 = scmp.ne.s32.totalorder %s312_s2, %s439_s28  ;;  %p445_p3 = scmp.lt.s32.totalorder %s439_s28, %s439_s28 }
  0x2b   :  { %345 = vmatmul.mubr.msk.f32.vlgmr.msra.gmra.mxu0 %vm62_vm1, %v54_v3  ;;  %358 = vmatprep.subr.mxu0 %v470_v0 }
  0x2c   :  { %366 = vmatprep.mubr.msk.f32.mxu0 %vm471_vm0, %v470_v0  ;;  %351 = vmatprep.subr.mxu1 %v470_v0  ;;  %p446_p4 = por %p445_p3, %p444_p2 }
  0x2d   :  { %352 = vmatpush3.msra.mxu1 %v138_v6  ;;  %359 = vmatpush3.msra.mxu0 %v224_v8 }
  0x2e   :  { %353 = vmatprep.subr.mxu1 %v470_v0  ;;  %360 = vmatprep.subr.mxu0 %v470_v0  ;;  %p447_p5 = pnand %p446_p4, %p440_p1 }
  0x2f   :  { %354 = vmatpush3.msra.mxu1 %v137_v7  ;;  %361 = vmatpush3.msra.mxu0 %v223_v14 }
  0x30   :  { %362 = vmatprep.subr.mxu0 %v470_v0 }
  0x31   :  { %363 = vmatpush3.msra.mxu0 %v222_v15 }
  0x32   :  { %364 = vmatprep.subr.mxu0 %v470_v0 }
  0x33   :  { %365 = vmatpush3.msra.mxu0 %v221_v16 }
  0xeb   :  { %v132_v10 = vpop.f32.mrf.mxu0 }
  0xec   :  { %v133_v11 = vadd.f32 %v321_v9, %v132_v10 }
  0xed   :  { %v346_v12 = vpop.f32.mrf.mxu0 }
  0xee   :  { %v136_v13 = vmax.f32 %v133_v11, 0.0 }
  0xf0   :  { %356 = vmatmul.mubr.msk.f32.vlgmr.msra.gmra.mxu1 %vm146_vm2, %v136_v13 }
 0x1b0   :  { %v216_v18 = vpop.f32.mrf.mxu1 }
 0x1b1   :  { %v217_v19 = vadd.f32 %v323_v17, %v216_v18 }
 0x1b2   :  { %v357_v20 = vpop.f32.mrf.mxu1 }
 0x1b3   :  { %v220_v21 = vmax.f32 %v217_v19, 0.0 }
 0x1b5   :  { %367 = vmatmul.mubr.msk.f32.vlgmr.msra.gmra.mxu0 %vm146_vm2, %v220_v21 }
 0x275   :  { %v299_v23 = vpop.f32.mrf.mxu0 }
 0x276   :  { %v300_v24 = vadd.f32 %v325_v22, %v299_v23 }
 0x277   :  { %v368_v25 = vpop.f32.mrf.mxu0 }
 0x278   :  { %377 = vtanh.f32 %v300_v24 }
 0x285   :  { %v378_v26 = vpop.eup %377 }
 0x286   :  { %304 = vst [vmem:[#allocation8] sm:$0xf] %v378_v26 }
 0x287   :  { %450 = shalt.err (!%p447_p5)
}
 0x288   :  { %314 = dma.vmem_to_hbm [thread:$0]  %s312_s2, 64, %s513_s3, [#allocation4]  }
 0x289   :  { %463 = dma.done.wait [#allocation4], 64  }
 0x28a   :  { %464 = vsyncadd [#allocation4], 4294967232 }
 0x28b   :  { %318 = vsyncpa [#allocation3], 1 }
 0x28c   :  { %319 = vsyncpa [#allocation6], 1 }
 0x28d   :  { %320 = vsyncpa [#allocation4], 1 }

</bundles_post_ra>
